<compile_context>
chip_gen: v5e
topology: v5e:2x2
jax: 0.10.0
libtpu: 0.0.40
codegen_flags: <defaults>
</compile_context>

<pallas_src>
from functools import partial

import jax
import jax.numpy as jnp
from jax.experimental import pallas as pl
from jax.experimental.pallas import tpu as pltpu


def _round_up(a: int, b: int) -> int:
    return (a + b - 1) // b * b


def _const_kv_att_kernel(*refs, has_mask: bool, num_kv: int, inv_hdim: float):
    if has_mask:
        x_ref, wq_ref, kT_ref, v_ref, mask_ref, o_ref = refs
    else:
        x_ref, wq_ref, kT_ref, v_ref, o_ref = refs
        mask_ref = None

    x = x_ref[...]                                            # (TM, dim)

    # xq = x @ Wq^T   (Wq pre-transposed / padded to (dim, hdim_p))
    xq = jnp.dot(x, wq_ref[...], preferred_element_type=jnp.float32)
    xq = xq.astype(x_ref.dtype)          # keep MXU operands in model dtype

    # scores = (xq @ k^T) * (1/hdim)     (mul by constant, not divide)
    scores = jnp.dot(xq, kT_ref[...], preferred_element_type=jnp.float32)
    scores = scores * jnp.float32(inv_hdim)

    if mask_ref is not None:
        scores = scores + mask_ref[...].astype(jnp.float32)

    # Neutralise zero-padded kv columns (static condition -> compiled away
    # when num_kv is already a multiple of 128).
    if num_kv < scores.shape[-1]:
        col = jax.lax.broadcasted_iota(jnp.int32, scores.shape, 1)
        scores = jnp.where(col < num_kv, scores, jnp.float32(-1e30))

    # Softmax in f32 over the kv axis (matches .float() in the PyTorch src).
    m = jnp.max(scores, axis=-1, keepdims=True)
    e = jnp.exp(scores - m)
    denom = jnp.sum(e, axis=-1, keepdims=True)
    p = e * pl.reciprocal(denom, approx=True)
    p = p.astype(x_ref.dtype)                                 # .type_as(xq)

    out = jnp.dot(p, v_ref[...], preferred_element_type=jnp.float32)
    o_ref[...] = out.astype(o_ref.dtype)


def _pick_tm(M: int, dim: int, hdim_p: int, num_kv_p: int, itemsize: int,
             has_mask: bool) -> int:
    # Size the M tile against the smallest usable VMEM across generations
    # (v7x: 64 MiB physical, ~32 MiB scoped default) leaving headroom for the
    # resident weights and the f32 intermediates.
    budget = 24 * 1024 * 1024
    resident = (dim * hdim_p + 2 * num_kv_p * hdim_p) * itemsize
    per_row = (2 * (dim + hdim_p) * itemsize           # double-buffered x/out
               + 4 * (hdim_p + 2 * num_kv_p)           # f32 xq / scores / exp
               + (num_kv_p * itemsize * 2 if has_mask else 0))
    tm = (budget - resident) // max(per_row, 1)
    tm = max(8, min(1024, int(tm)))
    tm = (tm // 8) * 8
    # Don't pad tiny problems up to a huge tile.
    tm = min(tm, _round_up(M, 8))
    return max(tm, 8)


def const_kv_att(x, wq_weight, k, v, mask=None):
    """x: (bsz, seqlen, dim); wq_weight: (hdim, dim); k, v: (num_kv, hdim).

    mask (optional) is additive and broadcastable to (bsz, seqlen, num_kv).
    Returns (bsz, seqlen, hdim).
    """
    bsz, seqlen, dim = x.shape
    num_kv, hdim = k.shape
    M = bsz * seqlen

    hdim_p = _round_up(hdim, 128)
    num_kv_p = _round_up(num_kv, 128)
    has_mask = mask is not None
    itemsize = jnp.dtype(x.dtype).itemsize

    TM = _pick_tm(M, dim, hdim_p, num_kv_p, itemsize, has_mask)
    M_p = _round_up(M, TM)
    grid = (M_p // TM,)

    # ---- wrapper-side layout plumbing (glue, not compute) ----
    x2 = x.reshape(M, dim)
    if M_p != M:
        x2 = jnp.pad(x2, ((0, M_p - M), (0, 0)))

    wq_t = jnp.pad(wq_weight.T, ((0, 0), (0, hdim_p - hdim)))        # (dim, hdim_p)
    kT = jnp.pad(k.T, ((0, hdim_p - hdim), (0, num_kv_p - num_kv)))  # (hdim_p, nkv_p)
    v_p = jnp.pad(v, ((0, num_kv_p - num_kv), (0, hdim_p - hdim)))   # (nkv_p, hdim_p)

    in_specs = [
        pl.BlockSpec((TM, dim), lambda m: (m, 0)),
        pl.BlockSpec((dim, hdim_p), lambda m: (0, 0)),
        pl.BlockSpec((hdim_p, num_kv_p), lambda m: (0, 0)),
        pl.BlockSpec((num_kv_p, hdim_p), lambda m: (0, 0)),
    ]
    args = [x2, wq_t, kT, v_p]

    if has_mask:
        mask_full = jnp.broadcast_to(
            mask.astype(jnp.float32), (bsz, seqlen, num_kv)).reshape(M, num_kv)
        mask_full = jnp.pad(mask_full,
                            ((0, M_p - M), (0, num_kv_p - num_kv)))
        in_specs.append(pl.BlockSpec((TM, num_kv_p), lambda m: (m, 0)))
        args.append(mask_full)

    # VMEM budget estimate (double-buffered tiles + resident weights + f32 temps).
    est = (2 * (TM * dim + TM * hdim_p) * itemsize
           + (dim * hdim_p + hdim_p * num_kv_p + num_kv_p * hdim_p) * itemsize
           + (2 * TM * num_kv_p * 4 if has_mask else 0)
           + (TM * hdim_p + 2 * TM * num_kv_p) * 4)
    vmem_limit = int(min(max(2 * est, 32 * 1024 * 1024), 64 * 1024 * 1024))

    out = pl.pallas_call(
        partial(_const_kv_att_kernel, has_mask=has_mask,
                num_kv=num_kv, inv_hdim=1.0 / float(hdim)),
        out_shape=jax.ShapeDtypeStruct((M_p, hdim_p), x.dtype),
        grid=grid,
        in_specs=in_specs,
        out_specs=pl.BlockSpec((TM, hdim_p), lambda m: (m, 0)),
        compiler_params=pltpu.CompilerParams(
            dimension_semantics=("parallel",),
            vmem_limit_bytes=vmem_limit),
    )(*args)

    return out[:M, :hdim].reshape(bsz, seqlen, hdim)


def _reference(x, wq_weight, k, v, mask=None):
    xq = jnp.einsum("bsd,hd->bsh", x, wq_weight)
    scores = jnp.einsum("bsh,nh->bsn", xq, k) / k.shape[1]
    if mask is not None:
        scores = scores + mask
    p = jax.nn.softmax(scores.astype(jnp.float32), axis=-1).astype(xq.dtype)
    return jnp.einsum("bsn,nh->bsh", p, v)


if __name__ == "__main__":
    bsz, seqlen, dim, hdim, num_kv = 2, 8, 32, 32, 16

    key = jax.random.PRNGKey(0)
    kx, kw, kk, kv_, km = jax.random.split(key, 5)

    x = jax.random.normal(kx, (bsz, seqlen, dim), dtype=jnp.float32)
    # nn.Linear(dim, hdim, bias=False): weight shape (hdim, dim)
    wq_weight = jax.random.normal(kw, (hdim, dim), dtype=jnp.float32) * 0.1
    # k, v ~ N(0, 1), shape (num_kv, hdim)
    k = jax.random.normal(kk, (num_kv, hdim), dtype=jnp.float32)
    v = jax.random.normal(kv_, (num_kv, hdim), dtype=jnp.float32)
    # additive mask broadcast over batch
    mask = jnp.where(
        jax.random.uniform(km, (seqlen, num_kv)) > 0.8,
        jnp.float32(-1e9), jnp.float32(0.0))

    out = jax.block_until_ready(const_kv_att(x, wq_weight, k, v, mask))
    ref = _reference(x, wq_weight, k, v, mask)
    assert out.shape == (bsz, seqlen, hdim)
    # approx reciprocal in the softmax denominator -> slightly relaxed tol.
    assert jnp.allclose(out, ref, atol=2e-3, rtol=2e-3), float(
        jnp.max(jnp.abs(out - ref)))

    # also exercise the mask=None path (PyTorch skips the add)
    out_nomask = jax.block_until_ready(const_kv_att(x, wq_weight, k, v, None))
    assert jnp.allclose(out_nomask, _reference(x, wq_weight, k, v, None),
                        atol=2e-3, rtol=2e-3)

    print("KERNEL_OK")
</pallas_src>

<mosaic_0001>
module attributes {stable_mosaic.version = 11 : i64} {
  func.func @_const_kv_att_kernel(%arg0: i32, %arg1: memref<16x32xf32, #tpu.memory_space<vmem>>, %arg2: memref<32x128xf32, #tpu.memory_space<vmem>>, %arg3: memref<128x128xf32, #tpu.memory_space<vmem>>, %arg4: memref<128x128xf32, #tpu.memory_space<vmem>>, %arg5: memref<16x128xf32, #tpu.memory_space<vmem>>, %arg6: memref<16x128xf32, #tpu.memory_space<vmem>>) attributes {dimension_semantics = [#tpu.dimension_semantics<parallel>], iteration_bounds = array<i64: 1>, scalar_prefetch = 0 : i64, scratch_operands = 0 : i64, tpu.core_type = #tpu.core_type<tc>, window_params = [{transform_indices = @transform_0, window_bounds = array<i64: 16, 32>}, {pipeline_mode = #tpu.pipeline_mode<synchronous>, transform_indices = @transform_1, window_bounds = array<i64: 32, 128>}, {pipeline_mode = #tpu.pipeline_mode<synchronous>, transform_indices = @transform_2, window_bounds = array<i64: 128, 128>}, {pipeline_mode = #tpu.pipeline_mode<synchronous>, transform_indices = @transform_3, window_bounds = array<i64: 128, 128>}, {transform_indices = @transform_4, window_bounds = array<i64: 16, 128>}, {transform_indices = @transform_5, window_bounds = array<i64: 16, 128>}]} {
    %c0 = arith.constant 0 : index
    %c0_0 = arith.constant 0 : index
    %0 = vector.load %arg1[%c0, %c0_0] : memref<16x32xf32, #tpu.memory_space<vmem>>, vector<16x32xf32>
    %c0_1 = arith.constant 0 : index
    %c0_2 = arith.constant 0 : index
    %1 = vector.load %arg2[%c0_1, %c0_2] : memref<32x128xf32, #tpu.memory_space<vmem>>, vector<32x128xf32>
    %cst = arith.constant dense<0.000000e+00> : vector<16x128xf32>
    %2 = tpu.matmul %0, %1, %cst {dimension_numbers = #tpu.dot_dimension_numbers<[1], [0], [0], [1], [0, 0, 1, 1], [], []>} : vector<16x32xf32>, vector<32x128xf32>, vector<16x128xf32> -> vector<16x128xf32>
    %c0_3 = arith.constant 0 : index
    %c0_4 = arith.constant 0 : index
    %3 = vector.load %arg3[%c0_3, %c0_4] : memref<128x128xf32, #tpu.memory_space<vmem>>, vector<128x128xf32>
    %cst_5 = arith.constant dense<0.000000e+00> : vector<16x128xf32>
    %4 = tpu.matmul %2, %3, %cst_5 {dimension_numbers = #tpu.dot_dimension_numbers<[1], [0], [0], [1], [0, 0, 1, 1], [], []>} : vector<16x128xf32>, vector<128x128xf32>, vector<16x128xf32> -> vector<16x128xf32>
    %cst_6 = arith.constant 3.125000e-02 : f32
    %5 = vector.broadcast %cst_6 : f32 to vector<16x128xf32>
    %6 = arith.mulf %4, %5 : vector<16x128xf32>
    %c0_7 = arith.constant 0 : index
    %c0_8 = arith.constant 0 : index
    %7 = vector.load %arg5[%c0_7, %c0_8] : memref<16x128xf32, #tpu.memory_space<vmem>>, vector<16x128xf32>
    %8 = arith.addf %6, %7 : vector<16x128xf32>
    %9 = tpu.iota {dimensions = array<i32: 1>} : vector<16x128xi32>
    %c16_i32 = arith.constant 16 : i32
    %10 = vector.broadcast %c16_i32 : i32 to vector<16x128xi32>
    %11 = arith.cmpi slt, %9, %10 : vector<16x128xi32>
    %cst_9 = arith.constant -1.000000e+30 : f32
    %12 = vector.broadcast %cst_9 : f32 to vector<16x128xf32>
    %13 = arith.select %11, %8, %12 : vector<16x128xi1>, vector<16x128xf32>
    %cst_10 = arith.constant dense<0xFF800000> : vector<16xf32>
    %14 = vector.multi_reduction <maximumf>, %13, %cst_10 [1] : vector<16x128xf32> to vector<16xf32>
    %15 = vector.shape_cast %14 : vector<16xf32> to vector<16x1xf32>
    %16 = vector.broadcast %15 : vector<16x1xf32> to vector<16x128xf32>
    %17 = arith.subf %13, %16 : vector<16x128xf32>
    %18 = math.exp %17 : vector<16x128xf32>
    %cst_11 = arith.constant dense<0.000000e+00> : vector<16xf32>
    %19 = vector.multi_reduction <add>, %18, %cst_11 [1] : vector<16x128xf32> to vector<16xf32>
    %20 = vector.shape_cast %19 : vector<16xf32> to vector<16x1xf32>
    %21 = tpu.reciprocal %20 {approx = true} : vector<16x1xf32> -> vector<16x1xf32>
    %22 = vector.broadcast %21 : vector<16x1xf32> to vector<16x128xf32>
    %23 = arith.mulf %18, %22 : vector<16x128xf32>
    %c0_12 = arith.constant 0 : index
    %c0_13 = arith.constant 0 : index
    %24 = vector.load %arg4[%c0_12, %c0_13] : memref<128x128xf32, #tpu.memory_space<vmem>>, vector<128x128xf32>
    %cst_14 = arith.constant dense<0.000000e+00> : vector<16x128xf32>
    %25 = tpu.matmul %23, %24, %cst_14 {dimension_numbers = #tpu.dot_dimension_numbers<[1], [0], [0], [1], [0, 0, 1, 1], [], []>} : vector<16x128xf32>, vector<128x128xf32>, vector<16x128xf32> -> vector<16x128xf32>
    %c0_15 = arith.constant 0 : index
    %c0_16 = arith.constant 0 : index
    %26 = vector.load %arg6[%c0_15, %c0_16] : memref<16x128xf32, #tpu.memory_space<vmem>>, vector<16x128xf32>
    tpu.vector_store %arg6[%c0_15, %c0_16], %25 {strides = array<i32>} : memref<16x128xf32, #tpu.memory_space<vmem>>, vector<16x128xf32>,
    return
  }
  func.func @transform_0(%arg0: i32) -> (i32, i32) {
    %c0_i32 = arith.constant 0 : i32
    %c0_i32_0 = arith.constant 0 : i32
    return %arg0, %c0_i32 : i32, i32
  }
  func.func @transform_1(%arg0: i32) -> (i32, i32) {
    %c0_i32 = arith.constant 0 : i32
    %c0_i32_0 = arith.constant 0 : i32
    %c0_i32_1 = arith.constant 0 : i32
    return %c0_i32, %c0_i32_0 : i32, i32
  }
  func.func @transform_2(%arg0: i32) -> (i32, i32) {
    %c0_i32 = arith.constant 0 : i32
    %c0_i32_0 = arith.constant 0 : i32
    %c0_i32_1 = arith.constant 0 : i32
    return %c0_i32, %c0_i32_0 : i32, i32
  }
  func.func @transform_3(%arg0: i32) -> (i32, i32) {
    %c0_i32 = arith.constant 0 : i32
    %c0_i32_0 = arith.constant 0 : i32
    %c0_i32_1 = arith.constant 0 : i32
    return %c0_i32, %c0_i32_0 : i32, i32
  }
  func.func @transform_4(%arg0: i32) -> (i32, i32) {
    %c0_i32 = arith.constant 0 : i32
    %c0_i32_0 = arith.constant 0 : i32
    return %arg0, %c0_i32 : i32, i32
  }
  func.func @transform_5(%arg0: i32) -> (i32, i32) {
    %c0_i32 = arith.constant 0 : i32
    %c0_i32_0 = arith.constant 0 : i32
    return %arg0, %c0_i32 : i32, i32
  }
}

</mosaic_0001>

<bundles_post_ra>
// kernel: tpu_custom_call.1
= control target key start
LH: loop header
LB: loop body
LE: loop exit
PB: predicated region body
PF: predicated region fallthrough
CT: control target
= control target key end

     0   :  { %10 = vsyncpa [#allocation3], 0  ;;  %s527_s0 = inlined_call_operand.hbm [shape: f32[16,32], index: 0, kind: input, shape index: {}]   ;;  %s528_s1 = inlined_call_operand.hbm [shape: f32[32,128], index: 1, kind: input, shape index: {}]   ;;  %s529_s2 = inlined_call_operand.hbm [shape: f32[128,128], index: 2, kind: input, shape index: {}]   ;;  %s530_s3 = inlined_call_operand.hbm [shape: f32[128,128], index: 3, kind: input, shape index: {}]   ;;  %s531_s4 = inlined_call_operand.hbm [shape: f32[16,128], index: 4, kind: input, shape index: {}]   ;;  %s532_s5 = inlined_call_operand.hbm [shape: f32[16,128], index: 5, kind: output, shape index: {}]  }
   0x1   :  { %11 = vsyncpa [#allocation6], 0 }
   0x2   :  { %12 = vsyncpa [#allocation9], 0 }
   0x3   :  { %13 = vsyncpa [#allocation4], 0  ;;  %s31_s20 = sshll.u32 %s528_s1, 4  ;;  %s451_s21 = smov [#allocation5]   ;;  %s32_s20 = int_to_ptr.hbm [resolvable:$true] %s31_s20 }
   0x4   :  { %s33_s22 = sshll.u32 %s451_s21, 4  ;;  %s57_s25 = sshll.u32 %s530_s3, 4  ;;  %s34_s22 = int_to_ptr.vmem [resolvable:$true] %s33_s22  ;;  %s58_s25 = int_to_ptr.hbm [resolvable:$true] %s57_s25 }
   0x5   :  { %s452_s26 = smov 128   ;;  %s453_s27 = smov 8  }
   0x6   :  { %39 = dma.hbm_to_vmem [thread:$0]  %s32_s20, 512, %s34_s22, [#allocation6], %s452_s26, %s452_s26, %s453_s27  }
   0x7   :  { %s454_s28 = smov [#allocation8]   ;;  %s18_s1 = sshll.u32 %s527_s0, 4  ;;  %s19_s1 = int_to_ptr.hbm [resolvable:$true] %s18_s1 }
   0x8   :  { %s59_s29 = sshll.u32 %s454_s28, 4  ;;  %s44_s8 = sshll.u32 %s529_s2, 4  ;;  %s60_s29 = int_to_ptr.vmem [resolvable:$true] %s59_s29  ;;  %s45_s8 = int_to_ptr.hbm [resolvable:$true] %s44_s8 }
   0x9   :  { %65 = dma.hbm_to_vmem [thread:$0]  %s58_s25, 2048, %s60_s29, [#allocation9], %s452_s26, %s452_s26, %s453_s27  }
   0xa   :  { %s455_s9 = smov [#allocation2]   ;;  %s456_s11 = smov [#allocation7]  }
   0xb   :  { %s20_s10 = sshll.u32 %s455_s9, 4  ;;  %s46_s0 = sshll.u32 %s456_s11, 4  ;;  %s21_s10 = int_to_ptr.vmem [resolvable:$true] %s20_s10  ;;  %s47_s0 = int_to_ptr.vmem [resolvable:$true] %s46_s0 }
   0xc   :  { %26 = dma.hbm_to_vmem [thread:$0]  %s19_s1, 256, %s21_s10, [#allocation3], %s452_s26, %s452_s26, %s453_s27  }
   0xd   :  { %s70_s14 = sshll.u32 %s531_s4, 4  ;;  %s457_s2 = smov [#allocation10]   ;;  %s71_s14 = int_to_ptr.hbm [resolvable:$true] %s70_s14 }
   0xe   :  { %52 = dma.hbm_to_vmem [thread:$0]  %s45_s8, 2048, %s47_s0, [#allocation6], %s452_s26, %s452_s26, %s453_s27  }
   0xf   :  { %s72_s15 = sshll.u32 %s457_s2, 4  ;;  %s73_s15 = int_to_ptr.vmem [resolvable:$true] %s72_s15 }
  0x10   :  { %78 = dma.hbm_to_vmem [thread:$0]  %s71_s14, 256, %s73_s15, [#allocation9], %s452_s26, %s452_s26, %s453_s27  }
  0x11   :  { %443 = dma.done.wait [#allocation3], 256  }
  0x12   :  { %444 = vsyncadd [#allocation3], 4294967040 }
  0x13   :  { %445 = dma.done.wait [#allocation6], 2560  }
  0x14   :  { %446 = vsyncadd [#allocation6], 4294964736 }
  0x15   :  { %447 = dma.done.wait [#allocation9], 2304  }
  0x16   :  { %448 = vsyncadd [#allocation9], 4294964992  ;;  %v104_v0 = vld [vmem:[#allocation5 + $0x18] sm:$0xff]  ;;  %v103_v1 = vld [vmem:[#allocation5 + $0x10] sm:$0xff]  ;;  %vm105_vm0 = vcmask 261120   ;;  %v180_v24 = vlaneseq  ;;  %s458_s4 = smov [#allocation11]  }
  0x17   :  { %124 = vmatpush.msra.mxu0 %v104_v0  ;;  %v102_v2 = vld [vmem:[#allocation5 + $0x8] sm:$0xff]  ;;  %v150_v3 = vld [vmem:[#allocation7 + $0x78] sm:$0xff]  ;;  %v149_v4 = vld [vmem:[#allocation7 + $0x70] sm:$0xff]  ;;  %s248_s16 = sshll.u32 %s458_s4, 4  ;;  %s250_s19 = sshll.u32 %s532_s5, 4  ;;  %s249_s16 = int_to_ptr.vmem [resolvable:$true] %s248_s16  ;;  %s251_s19 = int_to_ptr.hbm [resolvable:$true] %s250_s19 }
  0x18   :  { %151 = vmatpush.msra.mxu1 %v150_v3  ;;  %v101_v5 = vld [vmem:[#allocation5] sm:$0xff]  ;;  %v148_v6 = vld [vmem:[#allocation7 + $0x68] sm:$0xff]  ;;  %267 = vmatpush.msra.mxu3 %v150_v3  ;;  %v99_v7 = vld [vmem:[#allocation2] sm:$0xff]  ;;  %v181_v25 = vand.u32 127, %v180_v24 }
  0x19   :  { %125 = vmatpush.msra.mxu0 %v103_v1  ;;  %v147_v8 = vld [vmem:[#allocation7 + $0x60] sm:$0xff]  ;;  %v146_v9 = vld [vmem:[#allocation7 + $0x58] sm:$0xff]  ;;  %v145_v10 = vld [vmem:[#allocation7 + $0x50] sm:$0xff] }
  0x1a   :  { %152 = vmatpush.msra.mxu1 %v149_v4  ;;  %268 = vmatpush.msra.mxu3 %v149_v4  ;;  %v144_v11 = vld [vmem:[#allocation7 + $0x48] sm:$0xff]  ;;  %v100_v12 = vld [vmem:[#allocation2 + $0x8] sm:$0xff]  ;;  %v143_v13 = vld [vmem:[#allocation7 + $0x40] sm:$0xff]  ;;  %vm182_vm1 = vcmp.lt.s32.totalorder %v181_v25, 16 }
  0x1b   :  { %126 = vmatpush.msra.mxu0 %v102_v2  ;;  %v142_v14 = vld [vmem:[#allocation7 + $0x38] sm:$0xff]  ;;  %v141_v15 = vld [vmem:[#allocation7 + $0x30] sm:$0xff]  ;;  %v140_v16 = vld [vmem:[#allocation7 + $0x28] sm:$0xff] }
  0x1c   :  { %153 = vmatpush.msra.mxu1 %v148_v6  ;;  %269 = vmatpush.msra.mxu3 %v148_v6  ;;  %v139_v17 = vld [vmem:[#allocation7 + $0x20] sm:$0xff]  ;;  %v138_v18 = vld [vmem:[#allocation7 + $0x18] sm:$0xff]  ;;  %v137_v19 = vld [vmem:[#allocation7 + $0x10] sm:$0xff] }
  0x1d   :  { %127 = vmatpush.msra.mxu0 %v101_v5  ;;  %v136_v20 = vld [vmem:[#allocation7 + $0x8] sm:$0xff]  ;;  %v135_v21 = vld [vmem:[#allocation7] sm:$0xff]  ;;  %v218_v36 = vld [vmem:[#allocation8 + $0x78] sm:$0xff] }
  0x1e   :  { %265 = vmatmul.msk.f32.vlgmr.msra.gmra.mxu0 %vm105_vm0, %v99_v7  ;;  %154 = vmatpush.msra.mxu1 %v147_v8  ;;  %v176_v27 = vld [vmem:[#allocation10] sm:$0xff]  ;;  %v177_v32 = vld [vmem:[#allocation10 + $0x8] sm:$0xff]  ;;  %v217_v37 = vld [vmem:[#allocation8 + $0x70] sm:$0xff] }
  0x1f   :  { %270 = vmatpush.msra.mxu3 %v147_v8  ;;  %219 = vmatpush.msra.mxu2 %v218_v36  ;;  %v216_v38 = vld [vmem:[#allocation8 + $0x68] sm:$0xff]  ;;  %v215_v39 = vld [vmem:[#allocation8 + $0x60] sm:$0xff]  ;;  %v214_v41 = vld [vmem:[#allocation8 + $0x58] sm:$0xff] }
  0x20   :  { %155 = vmatpush.msra.mxu1 %v146_v9  ;;  %v213_v43 = vld [vmem:[#allocation8 + $0x50] sm:$0xff]  ;;  %v212_v45 = vld [vmem:[#allocation8 + $0x48] sm:$0xff]  ;;  %v211_v46 = vld [vmem:[#allocation8 + $0x40] sm:$0xff] }
  0x21   :  { %271 = vmatpush.msra.mxu3 %v146_v9  ;;  %220 = vmatpush.msra.mxu2 %v217_v37  ;;  %v210_v47 = vld [vmem:[#allocation8 + $0x38] sm:$0xff]  ;;  %v209_v48 = vld [vmem:[#allocation8 + $0x30] sm:$0xff]  ;;  %v208_v50 = vld [vmem:[#allocation8 + $0x28] sm:$0xff] }
  0x22   :  { %156 = vmatpush.msra.mxu1 %v145_v10  ;;  %v207_v55 = vld [vmem:[#allocation8 + $0x20] sm:$0xff]  ;;  %v206_v56 = vld [vmem:[#allocation8 + $0x18] sm:$0xff]  ;;  %v205_v57 = vld [vmem:[#allocation8 + $0x10] sm:$0xff] }
  0x23   :  { %272 = vmatpush.msra.mxu3 %v145_v10  ;;  %221 = vmatpush.msra.mxu2 %v216_v38  ;;  %v204_v58 = vld [vmem:[#allocation8 + $0x8] sm:$0xff]  ;;  %v203_v59 = vld [vmem:[#allocation8] sm:$0xff] }
  0x24   :  { %157 = vmatpush.msra.mxu1 %v144_v11 }
  0x25   :  { %273 = vmatpush.msra.mxu3 %v144_v11  ;;  %222 = vmatpush.msra.mxu2 %v215_v39 }
  0x26   :  { %266 = vmatmul.msk.f32.gmra.mxu0 %vm105_vm0, %v100_v12  ;;  %158 = vmatpush.msra.mxu1 %v143_v13 }
  0x27   :  { %274 = vmatpush.msra.mxu3 %v143_v13  ;;  %223 = vmatpush.msra.mxu2 %v214_v41 }
  0x28   :  { %159 = vmatpush.msra.mxu1 %v142_v14 }
  0x29   :  { %275 = vmatpush.msra.mxu3 %v142_v14  ;;  %224 = vmatpush.msra.mxu2 %v213_v43 }
  0x2a   :  { %160 = vmatpush.msra.mxu1 %v141_v15 }
  0x2b   :  { %276 = vmatpush.msra.mxu3 %v141_v15  ;;  %225 = vmatpush.msra.mxu2 %v212_v45 }
  0x2c   :  { %161 = vmatpush.msra.mxu1 %v140_v16 }
  0x2d   :  { %277 = vmatpush.msra.mxu3 %v140_v16  ;;  %226 = vmatpush.msra.mxu2 %v211_v46 }
  0x2e   :  { %162 = vmatpush.msra.mxu1 %v139_v17 }
  0x2f   :  { %278 = vmatpush.msra.mxu3 %v139_v17  ;;  %227 = vmatpush.msra.mxu2 %v210_v47 }
  0x30   :  { %163 = vmatpush.msra.mxu1 %v138_v18 }
  0x31   :  { %279 = vmatpush.msra.mxu3 %v138_v18  ;;  %228 = vmatpush.msra.mxu2 %v209_v48 }
  0x32   :  { %164 = vmatpush.msra.mxu1 %v137_v19 }
  0x33   :  { %280 = vmatpush.msra.mxu3 %v137_v19  ;;  %229 = vmatpush.msra.mxu2 %v208_v50 }
  0x34   :  { %165 = vmatpush.msra.mxu1 %v136_v20 }
  0x35   :  { %281 = vmatpush.msra.mxu3 %v136_v20  ;;  %230 = vmatpush.msra.mxu2 %v207_v55 }
  0x36   :  { %166 = vmatpush.msra.mxu1 %v135_v21 }
  0x37   :  { %282 = vmatpush.msra.mxu3 %v135_v21  ;;  %231 = vmatpush.msra.mxu2 %v206_v56 }
  0x39   :  { %232 = vmatpush.msra.mxu2 %v205_v57 }
  0x3b   :  { %233 = vmatpush.msra.mxu2 %v204_v58 }
  0x3d   :  { %234 = vmatpush.msra.mxu2 %v203_v59 }
  0x9b   :  { %v129_v22 = vpop.f32.mrf.mxu0 }
  0x9c   :  { %167 = vmatmul.f32.vlgmr.msra.gmra.mxu1 %v129_v22 }
  0xa3   :  { %v132_v23 = vpop.f32.mrf.mxu0 }
  0xa4   :  { %170 = vmatmul.f32.vlgmr.msra.gmra.mxu3 %v132_v23 }
 0x119   :  { %v168_v26 = vpop.f32.mrf.mxu1 }
 0x11a   :  { %v174_v28 = vmul.f32 0.03125, %v168_v26 }
 0x11c   :  { %v178_v29 = vadd.f32 %v176_v27, %v174_v28 }
 0x11e   :  { %v183_v30 = vsel %vm182_vm1, %v178_v29, -1e+30 }
 0x11f   :  { %185 = vmax.xlane.f32.xlu0 %v183_v30 }
 0x127   :  { %v171_v31 = vpop.f32.mrf.mxu3 }
 0x128   :  { %v175_v33 = vmul.f32 0.03125, %v171_v31 }
 0x12a   :  { %v179_v34 = vadd.f32 %v177_v32, %v175_v33 }
 0x12c   :  { %v184_v35 = vsel %vm182_vm1, %v179_v34, -1e+30 }
 0x12d   :  { %187 = vmax.xlane.f32.xlu0 %v184_v35 }
 0x192   :  { %v186_v40 = vpop.xlane.xlu0 %185 }
 0x193   :  { %v189_v42 = vsub.f32 %v183_v30, %v186_v40 }
 0x195   :  { %v191_v44 = vmul.f32 1.442695, %v189_v42 }
 0x197   :  { %291 = vpow2.f32 %v191_v44 }
 0x19d   :  { %v292_v49 = vpop.eup %291 }
 0x19e   :  { %195 = vadd.xlane.f32.xlu1 %v292_v49 }
 0x1a0   :  { %v188_v51 = vpop.xlane.xlu0 %187 }
 0x1a1   :  { %v190_v52 = vsub.f32 %v184_v35, %v188_v51 }
 0x1a3   :  { %v193_v53 = vmul.f32 1.442695, %v190_v52 }
 0x1a5   :  { %293 = vpow2.f32 %v193_v53 }
 0x1ab   :  { %v294_v54 = vpop.eup %293 }
 0x1ac   :  { %197 = vadd.xlane.f32.xlu1 %v294_v54 }
 0x211   :  { %v196_v60 = vpop.xlane.xlu1 %195 }
 0x212   :  { %295 = vrcp.f32 %v196_v60 }
 0x218   :  { %v296_v61 = vpop.eup %295 }
 0x219   :  { %v201_v62 = vmul.f32 %v296_v61, %v292_v49 }
 0x21b   :  { %235 = vmatmul.f32.vlgmr.msra.gmra.mxu2 %v201_v62 }
 0x21f   :  { %v198_v63 = vpop.xlane.xlu1 %197 }
 0x220   :  { %297 = vrcp.f32 %v198_v63 }
 0x226   :  { %v298_v0 = vpop.eup %297 }
 0x227   :  { %v202_v1 = vmul.f32 %v298_v0, %v294_v54 }
 0x229   :  { %238 = vmatmul.f32.gmra.mxu2 %v202_v1 }
 0x29e   :  { %v236_v2 = vpop.f32.mrf.mxu2 }
 0x29f   :  { %242 = vst [vmem:[#allocation11] sm:$0xff] %v236_v2 }
 0x2ac   :  { %v239_v3 = vpop.f32.mrf.mxu2 }
 0x2ad   :  { %243 = vst [vmem:[#allocation11 + $0x8] sm:$0xff] %v239_v3 }
 0x2ae   :  { %256 = dma.vmem_to_hbm [thread:$0]  %s249_s16, 256, %s251_s19, [#allocation4], %s452_s26, %s452_s26, %s453_s27  }
 0x2af   :  { %449 = dma.done.wait [#allocation4], 256  }
 0x2b0   :  { %450 = vsyncadd [#allocation4], 4294967040 }
 0x2b1   :  { %261 = vsyncpa [#allocation3], 1 }
 0x2b2   :  { %262 = vsyncpa [#allocation6], 1 }
 0x2b3   :  { %263 = vsyncpa [#allocation9], 1 }
 0x2b4   :  { %264 = vsyncpa [#allocation4], 1 }

</bundles_post_ra>
